<compile_context>
chip_gen: v5e
topology: v5e:2x2
jax: 0.10.0
libtpu: 0.0.40
codegen_flags: <defaults>
</compile_context>

<pallas_src>
import functools

import jax
import jax.numpy as jnp
from jax.experimental import pallas as pl
from jax.experimental.pallas import tpu as pltpu

BN_EPS = 1e-5
LANE = 128          # lane width (last dim)
SUBLANE = 8         # f32 sublane width (second-to-last dim)

_FUSED_ROW_LIMIT = 512      # use the single fused call up to this many rows
_DEFAULT_BATCH_TILE = 512   # batch-tile rows for the segmented path (v7x-safe)


def _round_up(x, m):
    return (x + m - 1) // m * m


# ---------------------------------------------------------------------------
# Fused single-call path (whole forward in one kernel, weights VMEM-resident)
# ---------------------------------------------------------------------------
def _fused_ae_kernel(x_ref, w_ref, vec_ref, o_ref, *, layer_cfg, n_valid, n_pad):
    """x_ref:(n_pad,Dp) f32; w_ref:(L,Dp,Dp) bf16; vec_ref:(L,8,Dp) f32.

    vec_ref rows per layer: 0=bias, 1=gamma, 2=beta (rows 3..7 zero).
    """
    h = x_ref[...]                                    # f32, stays VMEM-resident
    inv_n = 1.0 / float(n_valid)
    need_mask = n_valid != n_pad                      # compile-time constant
    if need_mask:
        rid = jax.lax.broadcasted_iota(jnp.int32, (n_pad, 1), 0)
        row_mask = (rid < n_valid).astype(jnp.float32)

    for li, (use_bn, act) in enumerate(layer_cfg):
        if use_bn and need_mask:
            # Zero padded batch rows so they contribute nothing to the BN sums
            # (BN-layer linears carry no bias, so padded rows of y stay zero).
            h = h * row_mask

        # bf16 MXU matmul, f32 accumulation.
        y = jnp.dot(h.astype(jnp.bfloat16), w_ref[li],
                    preferred_element_type=jnp.float32)

        if use_bn:
            # One-pass moments (padded rows are exactly zero -> just divide by n).
            s1 = jnp.sum(y, axis=0, keepdims=True)
            s2 = jnp.sum(y * y, axis=0, keepdims=True)
            mean = s1 * inv_n
            var = jnp.maximum(s2 * inv_n - mean * mean, 0.0)
            # Fused affine: all (1,Dp)-width, then one full-width mul + add.
            scale = jax.lax.rsqrt(var + BN_EPS) * vec_ref[li, 1:2, :]
            shift = vec_ref[li, 2:3, :] - mean * scale
            y = y * scale + shift
        else:
            y = y + vec_ref[li, 0:1, :]               # bias only for non-BN layers

        if act == "relu":
            y = jnp.maximum(y, 0.0)
        else:  # sigmoid: exp + approx reciprocal -> EUP slot
            y = pl.reciprocal(1.0 + jnp.exp(-y), approx=True)
        h = y

    o_ref[...] = h


def _forward_fused(x, params):
    layers = params["layers"]
    Dp = params["Dp"]
    L = len(layers)
    n, d_in = x.shape
    d_out = layers[-1]["d_out"]
    n_pad = _round_up(max(n, SUBLANE), SUBLANE)

    xp = jnp.zeros((n_pad, Dp), jnp.float32).at[:n, :d_in].set(x)
    w_stack = params["w_stack"]        # (L, Dp, Dp) bf16
    vec_stack = params["vec_stack"]    # (L, 8, Dp) f32

    kernel = functools.partial(_fused_ae_kernel, layer_cfg=params["cfg"],
                               n_valid=n, n_pad=n_pad)

    bytes_accessed = (n_pad * Dp * 4            # x
                      + L * Dp * Dp * 2         # bf16 weights
                      + L * 8 * Dp * 4          # vec stack
                      + n_pad * Dp * 4)         # output
    cost = pl.CostEstimate(flops=2 * n_pad * Dp * Dp * L,
                           transcendentals=n_pad * Dp,
                           bytes_accessed=bytes_accessed)

    out = pl.pallas_call(
        kernel,
        out_shape=jax.ShapeDtypeStruct((n_pad, Dp), jnp.float32),
        in_specs=[pl.BlockSpec((n_pad, Dp), lambda: (0, 0)),
                  pl.BlockSpec((L, Dp, Dp), lambda: (0, 0, 0)),
                  pl.BlockSpec((L, 8, Dp), lambda: (0, 0, 0))],
        out_specs=pl.BlockSpec((n_pad, Dp), lambda: (0, 0)),
        cost_estimate=cost,
    )(xp, w_stack, vec_stack)

    return out[:n, :d_out]


# ---------------------------------------------------------------------------
# Batch-tiled segmented path (cross-tile BatchNorm for large batches)
# ---------------------------------------------------------------------------
def _segment_kernel(*refs, bn_in, bn_in_act, full_acts, tail,
                    n_valid, n_pad_total, tile):
    """One forward segment over one batch tile.

    Ref order: h_in, [bn_vec], (w, vec)*len(full_acts), [w_tail],
               out_y, [out_sums].
    A segment optionally applies the previous BN's fused affine (+act), then
    runs full non-BN layers (linear+bias+act), and optionally ends with the
    bias-free linear of the next BN layer, emitting per-tile moments.
    """
    pos = 0
    h = refs[pos][...]
    pos += 1

    if bn_in:
        bnv = refs[pos]          # (8, Dp): row 0 = scale, row 1 = shift
        pos += 1
        h = h * bnv[0:1, :] + bnv[1:2, :]
        if bn_in_act == "relu":
            h = jnp.maximum(h, 0.0)
        else:
            h = pl.reciprocal(1.0 + jnp.exp(-h), approx=True)

    for act in full_acts:
        w_ref = refs[pos]
        v_ref = refs[pos + 1]
        pos += 2
        h = jnp.dot(h.astype(jnp.bfloat16), w_ref[...],
                    preferred_element_type=jnp.float32) + v_ref[0:1, :]
        if act == "relu":
            h = jnp.maximum(h, 0.0)
        else:
            h = pl.reciprocal(1.0 + jnp.exp(-h), approx=True)

    if tail:
        w_ref = refs[pos]
        y_ref = refs[pos + 1]
        sums_ref = refs[pos + 2]
        if n_valid != n_pad_total:
            # Only padded rows (last tile) are zeroed so they don't pollute
            # the cross-tile BN sums.
            rid = (pl.program_id(0) * tile
                   + jax.lax.broadcasted_iota(jnp.int32, (tile, 1), 0))
            h = jnp.where(rid < n_valid, h, 0.0)
        y = jnp.dot(h.astype(jnp.bfloat16), w_ref[...],
                    preferred_element_type=jnp.float32)
        y_ref[...] = y
        sums_ref[0, 0:1, :] = jnp.sum(y, axis=0, keepdims=True)
        sums_ref[0, 1:2, :] = jnp.sum(y * y, axis=0, keepdims=True)
        sums_ref[0, 2:, :] = jnp.zeros((6, y.shape[1]), jnp.float32)
    else:
        refs[pos][...] = h


def _build_segments(layers):
    """Split the layer list at every BN sync point.

    Each segment = (bn_in_layer_idx or None, [full non-BN layer idxs],
                    tail_BN_layer_idx or None).
    """
    segs = []
    L = len(layers)
    i = 0
    bn_in = None
    while i < L:
        full = []
        while i < L and not layers[i]["use_bn"]:
            full.append(i)
            i += 1
        tail = None
        if i < L:                 # layers[i] is a BN layer -> stop after its linear
            tail = i
            i += 1
        segs.append((bn_in, full, tail))
        bn_in = tail
        if tail is None:
            break
    return segs


def _forward_segmented(x, params, batch_tile):
    layers = params["layers"]
    w_stack = params["w_stack"]
    vec_stack = params["vec_stack"]
    Dp = params["Dp"]
    n, d_in = x.shape
    d_out = layers[-1]["d_out"]

    tile = _round_up(max(min(batch_tile, max(n, 1)), SUBLANE), SUBLANE)
    n_pad = _round_up(max(n, tile), tile)
    n_tiles = n_pad // tile

    h = jnp.zeros((n_pad, Dp), jnp.float32).at[:n, :d_in].set(x)
    bn_vec = None

    for (bn_in_idx, full_idxs, tail_idx) in _build_segments(layers):
        inputs = [h]
        in_specs = [pl.BlockSpec((tile, Dp), lambda t: (t, 0))]
        seg_bytes = n_pad * Dp * 4

        bn_in = bn_in_idx is not None
        bn_in_act = layers[bn_in_idx]["act"] if bn_in else "relu"
        if bn_in:
            inputs.append(bn_vec)
            in_specs.append(pl.BlockSpec((8, Dp), lambda t: (0, 0)))
            seg_bytes += 8 * Dp * 4

        full_acts = []
        for li in full_idxs:
            inputs += [w_stack[li], vec_stack[li]]
            in_specs += [pl.BlockSpec((Dp, Dp), lambda t: (0, 0)),
                         pl.BlockSpec((8, Dp), lambda t: (0, 0))]
            full_acts.append(layers[li]["act"])
            seg_bytes += Dp * Dp * 2 + 8 * Dp * 4

        has_tail = tail_idx is not None
        if has_tail:
            inputs.append(w_stack[tail_idx])
            in_specs.append(pl.BlockSpec((Dp, Dp), lambda t: (0, 0)))
            seg_bytes += Dp * Dp * 2
            out_shape = (jax.ShapeDtypeStruct((n_pad, Dp), jnp.float32),
                         jax.ShapeDtypeStruct((n_tiles, 8, Dp), jnp.float32))
            out_specs = (pl.BlockSpec((tile, Dp), lambda t: (t, 0)),
                         pl.BlockSpec((1, 8, Dp), lambda t: (t, 0, 0)))
            seg_bytes += n_pad * Dp * 4 + n_tiles * 8 * Dp * 4
        else:
            out_shape = jax.ShapeDtypeStruct((n_pad, Dp), jnp.float32)
            out_specs = pl.BlockSpec((tile, Dp), lambda t: (t, 0))
            seg_bytes += n_pad * Dp * 4

        n_mm = len(full_acts) + (1 if has_tail else 0)
        n_transc = n_pad * Dp if "sigmoid" in full_acts else 0
        cost = pl.CostEstimate(flops=2 * n_pad * Dp * Dp * max(n_mm, 1),
                               transcendentals=n_transc,
                               bytes_accessed=seg_bytes)

        kernel = functools.partial(
            _segment_kernel, bn_in=bn_in, bn_in_act=bn_in_act,
            full_acts=tuple(full_acts), tail=has_tail,
            n_valid=n, n_pad_total=n_pad, tile=tile)

        out = pl.pallas_call(
            kernel,
            out_shape=out_shape,
            grid=(n_tiles,),
            in_specs=in_specs,
            out_specs=out_specs,
            compiler_params=pltpu.CompilerParams(
                dimension_semantics=("parallel",)),   # v7x: shard over 2 TCs
            cost_estimate=cost,
        )(*inputs)

        if has_tail:
            y, sums = out
            # Finalize BN stats across tiles in plain JAX (tiny (Dp,) work).
            s1 = jnp.sum(sums[:, 0, :], axis=0)
            s2 = jnp.sum(sums[:, 1, :], axis=0)
            mean = s1 / n
            var = jnp.maximum(s2 / n - mean * mean, 0.0)
            gamma = vec_stack[tail_idx, 1]
            beta = vec_stack[tail_idx, 2]
            scale = jax.lax.rsqrt(var + BN_EPS) * gamma
            shift = beta - mean * scale
            bn_vec = (jnp.zeros((8, Dp), jnp.float32)
                      .at[0].set(scale).at[1].set(shift))
            h = y
        else:
            h = out

    return h[:n, :d_out]


# ---------------------------------------------------------------------------
# Parameter init (matches the PyTorch module construction order) + wrapper
# ---------------------------------------------------------------------------
def _xavier_uniform(key, fan_in, fan_out):
    bound = (6.0 / (fan_in + fan_out)) ** 0.5
    # Stored as [in, out] so the kernel can do x @ W directly.
    return jax.random.uniform(key, (fan_in, fan_out), jnp.float32, -bound, bound)


def init_autoencoder_params(key, inputD, encoding_dim):
    spec = [(inputD, encoding_dim[0], False, "relu")]
    for l in range(1, len(encoding_dim)):
        spec.append((encoding_dim[l - 1], encoding_dim[l], True, "relu"))
    for l in range(len(encoding_dim) - 1, 0, -1):
        spec.append((encoding_dim[l], encoding_dim[l - 1], True, "relu"))
    spec.append((encoding_dim[0], inputD, False, "sigmoid"))

    # Single global padded feature width so every layer stacks into one buffer.
    # (Wastes MXU FLOPs for the 16/32/64 dims, but with K=N=128 fixed the only
    #  real MXU lever is the batch (M) dimension — per the review.)
    Dp = _round_up(max([inputD] + list(encoding_dim)), LANE)

    layers = []
    for (fi, fo, use_bn, act) in spec:
        key, k = jax.random.split(key)
        w = _xavier_uniform(k, fi, fo)
        b = jnp.full((fo,), 0.01, jnp.float32)
        gamma = jnp.ones((fo,), jnp.float32)
        beta = jnp.zeros((fo,), jnp.float32)

        w_pad = (jnp.zeros((Dp, Dp), jnp.float32)
                 .at[:fi, :fo].set(w).astype(jnp.bfloat16))
        vec_pad = (jnp.zeros((8, Dp), jnp.float32)
                   .at[0, :fo].set(b).at[1, :fo].set(gamma).at[2, :fo].set(beta))

        layers.append(dict(w=w, b=b[None, :], gamma=gamma[None, :],
                           beta=beta[None, :], w_pad=w_pad, vec_pad=vec_pad,
                           use_bn=use_bn, act=act, d_in=fi, d_out=fo))

    return dict(
        layers=layers,
        w_stack=jnp.stack([l["w_pad"] for l in layers]),     # (L, Dp, Dp) bf16
        vec_stack=jnp.stack([l["vec_pad"] for l in layers]),  # (L, 8, Dp) f32
        cfg=tuple((l["use_bn"], l["act"]) for l in layers),
        Dp=Dp,
    )


def autoencoder_forward(x, params, batch_tile=None):
    """Forward pass.  Fused single call for small batches; batch-tiled
    segmented calls (cross-tile BN) for large batches or explicit batch_tile."""
    n = x.shape[0]
    if batch_tile is None:
        if n <= _FUSED_ROW_LIMIT:
            return _forward_fused(x, params)
        batch_tile = _DEFAULT_BATCH_TILE
    return _forward_segmented(x, params, batch_tile)


def _reference_forward(x, params):
    """Pure-JAX f32 reference (training-mode BN, exact sigmoid)."""
    for l in params["layers"]:
        y = x @ l["w"] + l["b"]
        if l["use_bn"]:
            mean = jnp.mean(y, axis=0, keepdims=True)
            var = jnp.mean((y - mean) ** 2, axis=0, keepdims=True)
            y = (y - mean) * jax.lax.rsqrt(var + BN_EPS) * l["gamma"] + l["beta"]
        y = jnp.maximum(y, 0.0) if l["act"] == "relu" else jax.nn.sigmoid(y)
        x = y
    return x


if __name__ == "__main__":
    inputD = 64
    encoding_dim = (32, 16)

    key = jax.random.PRNGKey(0)
    key, kx1, kx2 = jax.random.split(key, 3)
    params = init_autoencoder_params(key, inputD, encoding_dim)

    # 1) Fused single-call path (small batch; non-multiple-of-8 to exercise the
    #    padded-row masking).
    x1 = jax.random.uniform(kx1, (10, inputD), jnp.float32)
    out1 = jax.block_until_ready(autoencoder_forward(x1, params))
    ref1 = _reference_forward(x1, params)
    assert out1.shape == (10, inputD)
    # bf16 MXU weights + approx reciprocal vs f32 reference -> loose tolerance.
    assert jnp.allclose(out1, ref1, atol=5e-2, rtol=5e-2), "fused path mismatch"

    # 2) Batch-tiled segmented path with cross-tile BN (tiny tile of 8 rows so
    #    the multi-tile accumulation + padded last tile are exercised cheaply).
    x2 = jax.random.uniform(kx2, (20, inputD), jnp.float32)
    out2 = jax.block_until_ready(autoencoder_forward(x2, params, batch_tile=8))
    ref2 = _reference_forward(x2, params)
    assert out2.shape == (20, inputD)
    assert jnp.allclose(out2, ref2, atol=5e-2, rtol=5e-2), "tiled path mismatch"

    print("KERNEL_OK")
</pallas_src>

<mosaic_0001>
module attributes {stable_mosaic.version = 11 : i64} {
  func.func @_fused_ae_kernel(%arg0: memref<16x128xf32, #tpu.memory_space<vmem>>, %arg1: memref<4x128x128xbf16, #tpu.memory_space<vmem>>, %arg2: memref<4x8x128xf32, #tpu.memory_space<vmem>>, %arg3: memref<16x128xf32, #tpu.memory_space<vmem>>) attributes {dimension_semantics = [], scalar_prefetch = 0 : i64, scratch_operands = 0 : i64, tpu.core_type = #tpu.core_type<tc>} {
    %c0 = arith.constant 0 : index
    %c0_0 = arith.constant 0 : index
    %0 = vector.load %arg0[%c0, %c0_0] : memref<16x128xf32, #tpu.memory_space<vmem>>, vector<16x128xf32>
    %1 = tpu.iota {dimensions = array<i32: 0>} : vector<16x1xi32>
    %c10_i32 = arith.constant 10 : i32
    %2 = vector.broadcast %c10_i32 : i32 to vector<16x1xi32>
    %3 = arith.cmpi slt, %1, %2 : vector<16x1xi32>
    %4 = arith.extui %3 : vector<16x1xi1> to vector<16x1xi32>
    %5 = arith.sitofp %4 : vector<16x1xi32> to vector<16x1xf32>
    %6 = arith.truncf %0 : vector<16x128xf32> to vector<16x128xbf16>
    %c0_1 = arith.constant 0 : index
    %c0_2 = arith.constant 0 : index
    %c0_3 = arith.constant 0 : index
    %7 = vector.load %arg1[%c0_1, %c0_2, %c0_3] : memref<4x128x128xbf16, #tpu.memory_space<vmem>>, vector<1x128x128xbf16>
    %8 = vector.shape_cast %7 : vector<1x128x128xbf16> to vector<128x128xbf16>
    %cst = arith.constant dense<0.000000e+00> : vector<16x128xf32>
    %9 = tpu.matmul %6, %8, %cst {dimension_numbers = #tpu.dot_dimension_numbers<[1], [0], [0], [1], [0, 0, 1, 1], [], []>} : vector<16x128xbf16>, vector<128x128xbf16>, vector<16x128xf32> -> vector<16x128xf32>
    %c0_4 = arith.constant 0 : index
    %c0_5 = arith.constant 0 : index
    %c0_6 = arith.constant 0 : index
    %10 = vector.load %arg2[%c0_4, %c0_5, %c0_6] : memref<4x8x128xf32, #tpu.memory_space<vmem>>, vector<1x1x128xf32>
    %11 = vector.shape_cast %10 : vector<1x1x128xf32> to vector<1x128xf32>
    %12 = vector.broadcast %11 : vector<1x128xf32> to vector<16x128xf32>
    %13 = arith.addf %9, %12 : vector<16x128xf32>
    %cst_7 = arith.constant 0.000000e+00 : f32
    %14 = vector.broadcast %cst_7 : f32 to vector<16x128xf32>
    %15 = arith.maximumf %13, %14 : vector<16x128xf32>
    %16 = vector.broadcast %5 : vector<16x1xf32> to vector<16x128xf32>
    %17 = arith.mulf %15, %16 : vector<16x128xf32>
    %18 = arith.truncf %17 : vector<16x128xf32> to vector<16x128xbf16>
    %c1 = arith.constant 1 : index
    %c0_8 = arith.constant 0 : index
    %c0_9 = arith.constant 0 : index
    %19 = vector.load %arg1[%c1, %c0_8, %c0_9] : memref<4x128x128xbf16, #tpu.memory_space<vmem>>, vector<1x128x128xbf16>
    %20 = vector.shape_cast %19 : vector<1x128x128xbf16> to vector<128x128xbf16>
    %cst_10 = arith.constant dense<0.000000e+00> : vector<16x128xf32>
    %21 = tpu.matmul %18, %20, %cst_10 {dimension_numbers = #tpu.dot_dimension_numbers<[1], [0], [0], [1], [0, 0, 1, 1], [], []>} : vector<16x128xbf16>, vector<128x128xbf16>, vector<16x128xf32> -> vector<16x128xf32>
    %cst_11 = arith.constant dense<0.000000e+00> : vector<128xf32>
    %22 = vector.multi_reduction <add>, %21, %cst_11 [0] : vector<16x128xf32> to vector<128xf32>
    %23 = vector.shape_cast %22 : vector<128xf32> to vector<1x128xf32>
    %24 = arith.mulf %21, %21 : vector<16x128xf32>
    %cst_12 = arith.constant dense<0.000000e+00> : vector<128xf32>
    %25 = vector.multi_reduction <add>, %24, %cst_12 [0] : vector<16x128xf32> to vector<128xf32>
    %26 = vector.shape_cast %25 : vector<128xf32> to vector<1x128xf32>
    %cst_13 = arith.constant 1.000000e-01 : f32
    %27 = vector.broadcast %cst_13 : f32 to vector<1x128xf32>
    %28 = arith.mulf %23, %27 : vector<1x128xf32>
    %cst_14 = arith.constant 1.000000e-01 : f32
    %29 = vector.broadcast %cst_14 : f32 to vector<1x128xf32>
    %30 = arith.mulf %26, %29 : vector<1x128xf32>
    %31 = arith.mulf %28, %28 : vector<1x128xf32>
    %32 = arith.subf %30, %31 : vector<1x128xf32>
    %cst_15 = arith.constant 0.000000e+00 : f32
    %33 = vector.broadcast %cst_15 : f32 to vector<1x128xf32>
    %34 = arith.maximumf %32, %33 : vector<1x128xf32>
    %cst_16 = arith.constant 9.99999974E-6 : f32
    %35 = vector.broadcast %cst_16 : f32 to vector<1x128xf32>
    %36 = arith.addf %34, %35 : vector<1x128xf32>
    %37 = math.rsqrt %36 : vector<1x128xf32>
    %c1_17 = arith.constant 1 : index
    %c1_18 = arith.constant 1 : index
    %c0_19 = arith.constant 0 : index
    %38 = vector.load %arg2[%c1_17, %c1_18, %c0_19] : memref<4x8x128xf32, #tpu.memory_space<vmem>>, vector<1x1x128xf32>
    %39 = vector.shape_cast %38 : vector<1x1x128xf32> to vector<1x128xf32>
    %40 = arith.mulf %37, %39 : vector<1x128xf32>
    %c1_20 = arith.constant 1 : index
    %c2 = arith.constant 2 : index
    %c0_21 = arith.constant 0 : index
    %41 = vector.load %arg2[%c1_20, %c2, %c0_21] : memref<4x8x128xf32, #tpu.memory_space<vmem>>, vector<1x1x128xf32>
    %42 = vector.shape_cast %41 : vector<1x1x128xf32> to vector<1x128xf32>
    %43 = arith.mulf %28, %40 : vector<1x128xf32>
    %44 = arith.subf %42, %43 : vector<1x128xf32>
    %45 = vector.broadcast %40 : vector<1x128xf32> to vector<16x128xf32>
    %46 = arith.mulf %21, %45 : vector<16x128xf32>
    %47 = vector.broadcast %44 : vector<1x128xf32> to vector<16x128xf32>
    %48 = arith.addf %46, %47 : vector<16x128xf32>
    %cst_22 = arith.constant 0.000000e+00 : f32
    %49 = vector.broadcast %cst_22 : f32 to vector<16x128xf32>
    %50 = arith.maximumf %48, %49 : vector<16x128xf32>
    %51 = vector.broadcast %5 : vector<16x1xf32> to vector<16x128xf32>
    %52 = arith.mulf %50, %51 : vector<16x128xf32>
    %53 = arith.truncf %52 : vector<16x128xf32> to vector<16x128xbf16>
    %c2_23 = arith.constant 2 : index
    %c0_24 = arith.constant 0 : index
    %c0_25 = arith.constant 0 : index
    %54 = vector.load %arg1[%c2_23, %c0_24, %c0_25] : memref<4x128x128xbf16, #tpu.memory_space<vmem>>, vector<1x128x128xbf16>
    %55 = vector.shape_cast %54 : vector<1x128x128xbf16> to vector<128x128xbf16>
    %cst_26 = arith.constant dense<0.000000e+00> : vector<16x128xf32>
    %56 = tpu.matmul %53, %55, %cst_26 {dimension_numbers = #tpu.dot_dimension_numbers<[1], [0], [0], [1], [0, 0, 1, 1], [], []>} : vector<16x128xbf16>, vector<128x128xbf16>, vector<16x128xf32> -> vector<16x128xf32>
    %cst_27 = arith.constant dense<0.000000e+00> : vector<128xf32>
    %57 = vector.multi_reduction <add>, %56, %cst_27 [0] : vector<16x128xf32> to vector<128xf32>
    %58 = vector.shape_cast %57 : vector<128xf32> to vector<1x128xf32>
    %59 = arith.mulf %56, %56 : vector<16x128xf32>
    %cst_28 = arith.constant dense<0.000000e+00> : vector<128xf32>
    %60 = vector.multi_reduction <add>, %59, %cst_28 [0] : vector<16x128xf32> to vector<128xf32>
    %61 = vector.shape_cast %60 : vector<128xf32> to vector<1x128xf32>
    %cst_29 = arith.constant 1.000000e-01 : f32
    %62 = vector.broadcast %cst_29 : f32 to vector<1x128xf32>
    %63 = arith.mulf %58, %62 : vector<1x128xf32>
    %cst_30 = arith.constant 1.000000e-01 : f32
    %64 = vector.broadcast %cst_30 : f32 to vector<1x128xf32>
    %65 = arith.mulf %61, %64 : vector<1x128xf32>
    %66 = arith.mulf %63, %63 : vector<1x128xf32>
    %67 = arith.subf %65, %66 : vector<1x128xf32>
    %cst_31 = arith.constant 0.000000e+00 : f32
    %68 = vector.broadcast %cst_31 : f32 to vector<1x128xf32>
    %69 = arith.maximumf %67, %68 : vector<1x128xf32>
    %cst_32 = arith.constant 9.99999974E-6 : f32
    %70 = vector.broadcast %cst_32 : f32 to vector<1x128xf32>
    %71 = arith.addf %69, %70 : vector<1x128xf32>
    %72 = math.rsqrt %71 : vector<1x128xf32>
    %c2_33 = arith.constant 2 : index
    %c1_34 = arith.constant 1 : index
    %c0_35 = arith.constant 0 : index
    %73 = vector.load %arg2[%c2_33, %c1_34, %c0_35] : memref<4x8x128xf32, #tpu.memory_space<vmem>>, vector<1x1x128xf32>
    %74 = vector.shape_cast %73 : vector<1x1x128xf32> to vector<1x128xf32>
    %75 = arith.mulf %72, %74 : vector<1x128xf32>
    %c2_36 = arith.constant 2 : index
    %c2_37 = arith.constant 2 : index
    %c0_38 = arith.constant 0 : index
    %76 = vector.load %arg2[%c2_36, %c2_37, %c0_38] : memref<4x8x128xf32, #tpu.memory_space<vmem>>, vector<1x1x128xf32>
    %77 = vector.shape_cast %76 : vector<1x1x128xf32> to vector<1x128xf32>
    %78 = arith.mulf %63, %75 : vector<1x128xf32>
    %79 = arith.subf %77, %78 : vector<1x128xf32>
    %80 = vector.broadcast %75 : vector<1x128xf32> to vector<16x128xf32>
    %81 = arith.mulf %56, %80 : vector<16x128xf32>
    %82 = vector.broadcast %79 : vector<1x128xf32> to vector<16x128xf32>
    %83 = arith.addf %81, %82 : vector<16x128xf32>
    %cst_39 = arith.constant 0.000000e+00 : f32
    %84 = vector.broadcast %cst_39 : f32 to vector<16x128xf32>
    %85 = arith.maximumf %83, %84 : vector<16x128xf32>
    %86 = arith.truncf %85 : vector<16x128xf32> to vector<16x128xbf16>
    %c3 = arith.constant 3 : index
    %c0_40 = arith.constant 0 : index
    %c0_41 = arith.constant 0 : index
    %87 = vector.load %arg1[%c3, %c0_40, %c0_41] : memref<4x128x128xbf16, #tpu.memory_space<vmem>>, vector<1x128x128xbf16>
    %88 = vector.shape_cast %87 : vector<1x128x128xbf16> to vector<128x128xbf16>
    %cst_42 = arith.constant dense<0.000000e+00> : vector<16x128xf32>
    %89 = tpu.matmul %86, %88, %cst_42 {dimension_numbers = #tpu.dot_dimension_numbers<[1], [0], [0], [1], [0, 0, 1, 1], [], []>} : vector<16x128xbf16>, vector<128x128xbf16>, vector<16x128xf32> -> vector<16x128xf32>
    %c3_43 = arith.constant 3 : index
    %c0_44 = arith.constant 0 : index
    %c0_45 = arith.constant 0 : index
    %90 = vector.load %arg2[%c3_43, %c0_44, %c0_45] : memref<4x8x128xf32, #tpu.memory_space<vmem>>, vector<1x1x128xf32>
    %91 = vector.shape_cast %90 : vector<1x1x128xf32> to vector<1x128xf32>
    %92 = vector.broadcast %91 : vector<1x128xf32> to vector<16x128xf32>
    %93 = arith.addf %89, %92 : vector<16x128xf32>
    %cst_46 = arith.constant 0.000000e+00 : f32
    %94 = vector.broadcast %cst_46 : f32 to vector<16x128xf32>
    %95 = arith.subf %94, %93 : vector<16x128xf32>
    %96 = math.exp %95 : vector<16x128xf32>
    %cst_47 = arith.constant 1.000000e+00 : f32
    %97 = vector.broadcast %cst_47 : f32 to vector<16x128xf32>
    %98 = arith.addf %97, %96 : vector<16x128xf32>
    %99 = tpu.reciprocal %98 {approx = true} : vector<16x128xf32> -> vector<16x128xf32>
    %c0_48 = arith.constant 0 : index
    %c0_49 = arith.constant 0 : index
    %100 = vector.load %arg3[%c0_48, %c0_49] : memref<16x128xf32, #tpu.memory_space<vmem>>, vector<16x128xf32>
    tpu.vector_store %arg3[%c0_48, %c0_49], %99 {strides = array<i32>} : memref<16x128xf32, #tpu.memory_space<vmem>>, vector<16x128xf32>,
    return
  }
}

</mosaic_0001>

<bundles_post_ra>
// kernel: tpu_custom_call.1
= control target key start
LH: loop header
LB: loop body
LE: loop exit
PB: predicated region body
PF: predicated region fallthrough
CT: control target
= control target key end

     0   :  { %8 = vsyncpa [#allocation3], 0  ;;  %s867_s0 = inlined_call_operand.hbm [shape: f32[16,128], index: 0, kind: input, shape index: {}]   ;;  %s868_s1 = inlined_call_operand.hbm [shape: bf16[4,128,128], index: 1, kind: input, shape index: {}]   ;;  %s869_s2 = inlined_call_operand.hbm [shape: f32[4,8,128], index: 2, kind: input, shape index: {}]   ;;  %s870_s3 = inlined_call_operand.hbm [shape: f32[16,128], index: 3, kind: output, shape index: {}]  }
   0x1   :  { %9 = vsyncpa [#allocation6], 0  ;;  %s28_s14 = sshll.u32 %s868_s1, 4  ;;  %s29_s14 = int_to_ptr.hbm [resolvable:$true] %s28_s14 }
   0x2   :  { %10 = vsyncpa [#allocation4], 0  ;;  %s813_s15 = smov [#allocation5]   ;;  %s15_s19 = sshll.u32 %s867_s0, 4  ;;  %s16_s19 = int_to_ptr.hbm [resolvable:$true] %s15_s19 }
   0x3   :  { %s30_s16 = sshll.u32 %s813_s15, 4  ;;  %s814_s20 = smov 64   ;;  %s31_s16 = int_to_ptr.vmem [resolvable:$true] %s30_s16 }
   0x4   :  { %s815_s21 = smov 4   ;;  %s816_s22 = smov [#allocation2]  }
   0x5   :  { %36 = dma.hbm_to_vmem [thread:$0]  %s29_s14, 4096, %s31_s16, [#allocation6], %s814_s20, %s814_s20, %s815_s21  }
   0x6   :  { %s17_s23 = sshll.u32 %s816_s22, 4  ;;  %s817_s24 = smov 128   ;;  %s18_s23 = int_to_ptr.vmem [resolvable:$true] %s17_s23 }
   0x7   :  { %s818_s25 = smov 8   ;;  %s41_s27 = sshll.u32 %s869_s2, 4  ;;  %s42_s27 = int_to_ptr.hbm [resolvable:$true] %s41_s27 }
   0x8   :  { %23 = dma.hbm_to_vmem [thread:$0]  %s16_s19, 256, %s18_s23, [#allocation3], %s817_s24, %s817_s24, %s818_s25  }
   0x9   :  { %s819_s28 = smov [#allocation7]  }
   0xa   :  { %s43_s0 = sshll.u32 %s819_s28, 4  ;;  %s44_s0 = int_to_ptr.vmem [resolvable:$true] %s43_s0 }
   0xb   :  { %49 = dma.hbm_to_vmem [thread:$0]  %s42_s27, 512, %s44_s0, [#allocation6], %s817_s24, %s817_s24, %s818_s25  }
   0xc   :  { %807 = dma.done.wait [#allocation3], 256  }
   0xd   :  { %808 = vsyncadd [#allocation3], 4294967040 }
   0xe   :  { %809 = dma.done.wait [#allocation6], 4608  }
   0xf   :  { %810 = vsyncadd [#allocation6], 4294962688  ;;  %v663_v0 = vld [vmem:[#allocation5 + $0x38] sm:$0xff]  ;;  %v662_v1 = vld [vmem:[#allocation5 + $0x30] sm:$0xff]  ;;  %v64_v19 = vlaneseq  ;;  %v820_v27 = vmov 0.0   ;;  %s821_s2 = smov [#allocation8]  }
  0x10   :  { %140 = vmatpush.bf16.msra.mxu0 %v663_v0  ;;  %v671_v2 = vld [vmem:[#allocation5 + $0x78] sm:$0xff]  ;;  %v670_v3 = vld [vmem:[#allocation5 + $0x70] sm:$0xff]  ;;  %v661_v4 = vld [vmem:[#allocation5 + $0x28] sm:$0xff]  ;;  %s511_s29 = sshll.u32 %s821_s2, 4  ;;  %s513_s5 = sshll.u32 %s870_s3, 4  ;;  %s512_s29 = int_to_ptr.vmem [resolvable:$true] %s511_s29  ;;  %s514_s5 = int_to_ptr.hbm [resolvable:$true] %s513_s5 }
  0x11   :  { %224 = vmatpush.bf16.msra.mxu1 %v671_v2  ;;  %v669_v5 = vld [vmem:[#allocation5 + $0x68] sm:$0xff]  ;;  %v660_v6 = vld [vmem:[#allocation5 + $0x20] sm:$0xff]  ;;  %v659_v8 = vld [vmem:[#allocation5 + $0x18] sm:$0xff]  ;;  %v65_v20 = vshrl.u32 %v64_v19, 7 }
  0x12   :  { %v668_v7 = vld [vmem:[#allocation5 + $0x60] sm:$0xff]  ;;  %v658_v9 = vld [vmem:[#allocation5 + $0x10] sm:$0xff]  ;;  %v657_v10 = vld [vmem:[#allocation5 + $0x8] sm:$0xff] }
  0x13   :  { %v656_v11 = vld [vmem:[#allocation5] sm:$0xff]  ;;  %v62_v12 = vld [vmem:[#allocation2] sm:$0xff]  ;;  %v63_v13 = vld [vmem:[#allocation2 + $0x8] sm:$0xff]  ;;  %v66_v22 = vadd.s32 8, %v65_v20 }
  0x14   :  { %141 = vmatpush.bf16.msra.mxu0 %v662_v1  ;;  %v73_v14 = vpack.c.bf16 %v63_v13, %v62_v12  ;;  %v667_v15 = vld [vmem:[#allocation5 + $0x58] sm:$0xff]  ;;  %v666_v16 = vld [vmem:[#allocation5 + $0x50] sm:$0xff]  ;;  %v665_v17 = vld [vmem:[#allocation5 + $0x48] sm:$0xff] }
  0x15   :  { %225 = vmatpush.bf16.msra.mxu1 %v670_v3  ;;  %v664_v18 = vld [vmem:[#allocation5 + $0x40] sm:$0xff]  ;;  %vm68_vm0 = vcmp.lt.s32.totalorder %v66_v22, 10  ;;  %v679_v34 = vld [vmem:[#allocation5 + $0xb8] sm:$0xff]  ;;  %v678_v35 = vld [vmem:[#allocation5 + $0xb0] sm:$0xff] }
  0x16   :  { %v697_v23 = vld [vmem:[#allocation7] ss:$0 sm:$0xff]  ;;  %v857_v28 = vsel %vm68_vm0, 1.0, %v820_v27  ;;  %352 = vmatpush.bf16.msra.mxu2 %v679_v34  ;;  %v677_v40 = vld [vmem:[#allocation5 + $0xa8] sm:$0xff]  ;;  %v675_v50 = vld [vmem:[#allocation5 + $0x98] sm:$0xff] }
  0x17   :  { %v676_v45 = vld [vmem:[#allocation5 + $0xa0] sm:$0xff]  ;;  %v674_v55 = vld [vmem:[#allocation5 + $0x90] sm:$0xff]  ;;  %v673_v60 = vld [vmem:[#allocation5 + $0x88] sm:$0xff] }
  0x18   :  { %142 = vmatpush.bf16.msra.mxu0 %v661_v4  ;;  %v672_v63 = vld [vmem:[#allocation5 + $0x80] sm:$0xff]  ;;  %v685_v27 = vld [vmem:[#allocation5 + $0xe8] sm:$0xff] }
  0x19   :  { %226 = vmatpush.bf16.msra.mxu1 %v669_v5  ;;  %v684_v34 = vld [vmem:[#allocation5 + $0xe0] sm:$0xff] }
  0x1a   :  { %353 = vmatpush.bf16.msra.mxu2 %v678_v35 }
  0x1c   :  { %143 = vmatpush.bf16.msra.mxu0 %v660_v6 }
  0x1d   :  { %227 = vmatpush.bf16.msra.mxu1 %v668_v7  ;;  %v271_v7 = vld [vmem:[#allocation7 + $0x9] sm:$0x1] }
  0x1e   :  { %354 = vmatpush.bf16.msra.mxu2 %v677_v40 }
  0x20   :  { %144 = vmatpush.bf16.msra.mxu0 %v659_v8 }
  0x21   :  { %228 = vmatpush.bf16.msra.mxu1 %v667_v15 }
  0x22   :  { %355 = vmatpush.bf16.msra.mxu2 %v676_v45 }
  0x24   :  { %145 = vmatpush.bf16.msra.mxu0 %v658_v9 }
  0x25   :  { %229 = vmatpush.bf16.msra.mxu1 %v666_v16 }
  0x26   :  { %356 = vmatpush.bf16.msra.mxu2 %v675_v50 }
  0x28   :  { %146 = vmatpush.bf16.msra.mxu0 %v657_v10  ;;  %v273_v10 = vld [vmem:[#allocation7 + $0xa] sm:$0x1] }
  0x29   :  { %230 = vmatpush.bf16.msra.mxu1 %v665_v17 }
  0x2a   :  { %357 = vmatpush.bf16.msra.mxu2 %v674_v55 }
  0x2c   :  { %147 = vmatpush.bf16.msra.mxu0 %v656_v11 }
  0x2d   :  { %231 = vmatpush.bf16.msra.mxu1 %v664_v18 }
  0x2e   :  { %358 = vmatpush.bf16.msra.mxu2 %v673_v60 }
  0x2f   :  { %148 = vmatmul.bf16.vlgmr.msra.gmra.mxu0 %v73_v14 }
  0x32   :  { %359 = vmatpush.bf16.msra.mxu2 %v672_v63 }
  0xac   :  { %v149_v21 = vpop.f32.mrf.mxu0 }
  0xad   :  { %v150_v25 = vadd.f32 %v697_v23, %v149_v21 }
  0xaf   :  { %v154_v30 = vmax.f32 %v150_v25, 0.0  ;;  %v686_v25 = vld [vmem:[#allocation5 + $0xf0] sm:$0xff] }
  0xb4   :  { %v151_v24 = vpop.f32.mrf.mxu0 }
  0xb5   :  { %v152_v26 = vadd.f32 %v697_v23, %v151_v24  ;;  %v687_v24 = vld [vmem:[#allocation5 + $0xf8] sm:$0xff] }
  0xb6   :  { %481 = vmatpush.bf16.msra.mxu3 %v687_v24 }
  0xb7   :  { %v155_v29 = vmax.f32 %v152_v26, 0.0 }
  0xb9   :  { %v157_v31 = vmul.f32 %v857_v28, %v155_v29 }
  0xba   :  { %482 = vmatpush.bf16.msra.mxu3 %v686_v25 }
  0xbb   :  { %v158_v32 = vpack.c.bf16 %v157_v31, %v154_v30 }
  0xbd   :  { %232 = vmatmul.bf16.vlgmr.msra.gmra.mxu1 %v158_v32 }
  0xbe   :  { %483 = vmatpush.bf16.msra.mxu3 %v685_v27 }
  0xc2   :  { %484 = vmatpush.bf16.msra.mxu3 %v684_v34 }
 0x13a   :  { %v233_v33 = vpop.f32.mrf.mxu1 }
 0x13b   :  { %v245_v37 = vmul.f32 %v233_v33, %v233_v33 }
 0x142   :  { %v235_v36 = vpop.f32.mrf.mxu1 }
 0x143   :  { %v238_v38 = vadd.f32 %v235_v36, %v233_v33  ;;  %v246_v39 = vmul.f32 %v235_v36, %v235_v36 }
 0x145   :  { %v239_v41 = vrot.slane %v238_v38, 4  ;;  %v247_v42 = vadd.f32 %v246_v39, %v245_v37 }
 0x147   :  { %v240_v43 = vadd.f32 %v239_v41, %v238_v38  ;;  %v248_v44 = vrot.slane %v247_v42, 4  ;;  %v683_v38 = vld [vmem:[#allocation5 + $0xd8] sm:$0xff] }
 0x148   :  { %485 = vmatpush.bf16.msra.mxu3 %v683_v38 }
 0x149   :  { %v241_v46 = vrot.slane %v240_v43, 2  ;;  %v249_v47 = vadd.f32 %v248_v44, %v247_v42 }
 0x14b   :  { %v242_v48 = vadd.f32 %v241_v46, %v240_v43  ;;  %v250_v49 = vrot.slane %v249_v47, 2  ;;  %v682_v43 = vld [vmem:[#allocation5 + $0xd0] sm:$0xff] }
 0x14c   :  { %486 = vmatpush.bf16.msra.mxu3 %v682_v43 }
 0x14d   :  { %v243_v51 = vrot.slane %v242_v48, 1  ;;  %v251_v52 = vadd.f32 %v250_v49, %v249_v47 }
 0x14f   :  { %v244_v53 = vadd.f32 %v243_v51, %v242_v48  ;;  %v252_v54 = vrot.slane %v251_v52, 1  ;;  %v681_v48 = vld [vmem:[#allocation5 + $0xc8] sm:$0xff] }
 0x150   :  { %487 = vmatpush.bf16.msra.mxu3 %v681_v48 }
 0x151   :  { %v253_v56 = vadd.f32 %v252_v54, %v251_v52  ;;  %v254_v57 = vmul.f32 0.1, %v244_v53  ;;  %v680_v52 = vld [vmem:[#allocation5 + $0xc0] sm:$0xff] }
 0x153   :  { %v255_v58 = vmul.f32 0.1, %v253_v56  ;;  %v256_v59 = vmul.f32 %v254_v57, %v254_v57 }
 0x154   :  { %488 = vmatpush.bf16.msra.mxu3 %v680_v52 }
 0x155   :  { %v257_v61 = vsub.f32 %v255_v58, %v256_v59 }
 0x157   :  { %v258_v62 = vmax.f32 %v257_v61, 0.0  ;;  %v399_v61 = vld [vmem:[#allocation7 + $0x11] sm:$0x1] }
 0x159   :  { %v259_v0 = vadd.f32 1e-05, %v258_v62 }
 0x15b   :  { %699 = vrsqrt.f32 %v259_v0  ;;  %vm266_vm2 = vweird.f32 %v259_v0 }
 0x161   :  { %v700_v1 = vpop.eup %699 }
 0x162   :  { %v261_v2 = vmul.f32 %v700_v1, %v259_v0  ;;  %vm267_vm1 = vweird.f32 %v700_v1  ;;  %v401_v0 = vld [vmem:[#allocation7 + $0x12] sm:$0x1] }
 0x163   :  { %vm268_vm3 = vmor %vm266_vm2, %vm267_vm1 }
 0x164   :  { %v262_v3 = vmul.f32 %v700_v1, %v261_v2 }
 0x166   :  { %v263_v4 = vmul.f32 0.5, %v262_v3 }
 0x168   :  { %v264_v5 = vsub.f32 1.5, %v263_v4 }
 0x16a   :  { %v265_v6 = vmul.f32 %v700_v1, %v264_v5 }
 0x16c   :  { %v269_v8 = vsel %vm268_vm3, %v700_v1, %v265_v6 }
 0x16d   :  { %v272_v9 = vmul.f32 %v271_v7, %v269_v8 }
 0x16f   :  { %v274_v11 = vmul.f32 %v272_v9, %v254_v57  ;;  %v276_v12 = vperm.slane %v272_v9, 0 }
 0x171   :  { %v275_v13 = vsub.f32 %v273_v10, %v274_v11  ;;  %v277_v14 = vmul.f32 %v276_v12, %v233_v33  ;;  %v278_v15 = vmul.f32 %v276_v12, %v235_v36  ;;  %v698_v12 = vld [vmem:[#allocation7 + $0x18] ss:$0 sm:$0xff] }
 0x173   :  { %v279_v16 = vperm.slane %v275_v13, 0 }
 0x175   :  { %v281_v17 = vadd.f32 %v279_v16, %v278_v15  ;;  %v280_v18 = vadd.f32 %v279_v16, %v277_v14 }
 0x177   :  { %v283_v19 = vmax.f32 %v281_v17, 0.0  ;;  %v282_v20 = vmax.f32 %v280_v18, 0.0 }
 0x179   :  { %v285_v21 = vmul.f32 %v857_v28, %v283_v19 }
 0x17b   :  { %v286_v22 = vpack.c.bf16 %v285_v21, %v282_v20 }
 0x17d   :  { %360 = vmatmul.bf16.vlgmr.msra.gmra.mxu2 %v286_v22 }
 0x200   :  { %v361_v23 = vpop.f32.mrf.mxu2 }
 0x201   :  { %v373_v29 = vmul.f32 %v361_v23, %v361_v23 }
 0x208   :  { %v363_v26 = vpop.f32.mrf.mxu2 }
 0x209   :  { %v366_v30 = vadd.f32 %v363_v26, %v361_v23  ;;  %v374_v31 = vmul.f32 %v363_v26, %v363_v26 }
 0x20b   :  { %v367_v32 = vrot.slane %v366_v30, 4  ;;  %v375_v33 = vadd.f32 %v374_v31, %v373_v29 }
 0x20d   :  { %v368_v35 = vadd.f32 %v367_v32, %v366_v30  ;;  %v376_v36 = vrot.slane %v375_v33, 4 }
 0x20f   :  { %v369_v28 = vrot.slane %v368_v35, 2  ;;  %v377_v37 = vadd.f32 %v376_v36, %v375_v33 }
 0x211   :  { %v370_v39 = vadd.f32 %v369_v28, %v368_v35  ;;  %v378_v40 = vrot.slane %v377_v37, 2 }
 0x213   :  { %v371_v41 = vrot.slane %v370_v39, 1  ;;  %v379_v42 = vadd.f32 %v378_v40, %v377_v37 }
 0x215   :  { %v372_v44 = vadd.f32 %v371_v41, %v370_v39  ;;  %v380_v45 = vrot.slane %v379_v42, 1 }
 0x217   :  { %v381_v46 = vadd.f32 %v380_v45, %v379_v42  ;;  %v382_v47 = vmul.f32 0.1, %v372_v44 }
 0x219   :  { %v383_v49 = vmul.f32 0.1, %v381_v46  ;;  %v384_v50 = vmul.f32 %v382_v47, %v382_v47 }
 0x21b   :  { %v385_v51 = vsub.f32 %v383_v49, %v384_v50 }
 0x21d   :  { %v386_v53 = vmax.f32 %v385_v51, 0.0 }
 0x21f   :  { %v387_v54 = vadd.f32 1e-05, %v386_v53 }
 0x221   :  { %701 = vrsqrt.f32 %v387_v54  ;;  %vm394_vm5 = vweird.f32 %v387_v54 }
 0x227   :  { %v702_v55 = vpop.eup %701 }
 0x228   :  { %v389_v56 = vmul.f32 %v702_v55, %v387_v54  ;;  %vm395_vm4 = vweird.f32 %v702_v55 }
 0x229   :  { %vm396_vm6 = vmor %vm394_vm5, %vm395_vm4 }
 0x22a   :  { %v390_v57 = vmul.f32 %v702_v55, %v389_v56 }
 0x22c   :  { %v391_v58 = vmul.f32 0.5, %v390_v57 }
 0x22e   :  { %v392_v59 = vsub.f32 1.5, %v391_v58 }
 0x230   :  { %v393_v60 = vmul.f32 %v702_v55, %v392_v59 }
 0x232   :  { %v397_v62 = vsel %vm396_vm6, %v702_v55, %v393_v60 }
 0x233   :  { %v400_v63 = vmul.f32 %v399_v61, %v397_v62 }
 0x235   :  { %v402_v1 = vmul.f32 %v400_v63, %v382_v47  ;;  %v404_v2 = vperm.slane %v400_v63, 0 }
 0x237   :  { %v403_v3 = vsub.f32 %v401_v0, %v402_v1  ;;  %v405_v4 = vmul.f32 %v404_v2, %v361_v23  ;;  %v406_v5 = vmul.f32 %v404_v2, %v363_v26 }
 0x239   :  { %v407_v6 = vperm.slane %v403_v3, 0 }
 0x23b   :  { %v409_v7 = vadd.f32 %v407_v6, %v406_v5  ;;  %v408_v8 = vadd.f32 %v407_v6, %v405_v4 }
 0x23d   :  { %v410_v9 = vmax.f32 %v408_v8, 0.0  ;;  %v411_v10 = vmax.f32 %v409_v7, 0.0 }
 0x23f   :  { %v412_v11 = vpack.c.bf16 %v411_v10, %v410_v9 }
 0x241   :  { %489 = vmatmul.bf16.vlgmr.msra.gmra.mxu3 %v412_v11 }
 0x2c4   :  { %v490_v13 = vpop.f32.mrf.mxu3 }
 0x2c5   :  { %v491_v14 = vadd.f32 %v698_v12, %v490_v13 }
 0x2c7   :  { %v495_v15 = vsub.f32 0.0, %v491_v14 }
 0x2c9   :  { %v497_v16 = vmul.f32 1.442695, %v495_v15 }
 0x2cb   :  { %703 = vpow2.f32 %v497_v16 }
 0x2cc   :  { %v492_v17 = vpop.f32.mrf.mxu3 }
 0x2cd   :  { %v493_v18 = vadd.f32 %v698_v12, %v492_v17 }
 0x2cf   :  { %v496_v19 = vsub.f32 0.0, %v493_v18 }
 0x2d1   :  { %v704_v20 = vpop.eup %703  ;;  %v499_v21 = vmul.f32 1.442695, %v496_v19 }
 0x2d2   :  { %v501_v22 = vadd.f32 1.0, %v704_v20 }
 0x2d3   :  { %705 = vpow2.f32 %v499_v21 }
 0x2d4   :  { %707 = vrcp.f32 %v501_v22 }
 0x2d9   :  { %v706_v23 = vpop.eup %705 }
 0x2da   :  { %v708_v24 = vpop.eup %707  ;;  %v502_v25 = vadd.f32 1.0, %v706_v23 }
 0x2db   :  { %505 = vst [vmem:[#allocation8] sm:$0xff] %v708_v24 }
 0x2dc   :  { %709 = vrcp.f32 %v502_v25 }
 0x2e2   :  { %v710_v26 = vpop.eup %709 }
 0x2e3   :  { %506 = vst [vmem:[#allocation8 + $0x8] sm:$0xff] %v710_v26 }
 0x2e4   :  { %519 = dma.vmem_to_hbm [thread:$0]  %s512_s29, 256, %s514_s5, [#allocation4], %s817_s24, %s817_s24, %s818_s25  }
 0x2e5   :  { %811 = dma.done.wait [#allocation4], 256  }
 0x2e6   :  { %812 = vsyncadd [#allocation4], 4294967040 }
 0x2e7   :  { %524 = vsyncpa [#allocation3], 1 }
 0x2e8   :  { %525 = vsyncpa [#allocation6], 1 }
 0x2e9   :  { %526 = vsyncpa [#allocation4], 1 }

</bundles_post_ra>
